<compile_context>
chip_gen: v5e
topology: v5e:2x2
jax: 0.10.0
libtpu: 0.0.40
codegen_flags: <defaults>
</compile_context>

<pallas_src>
import math
import functools

import jax
import jax.numpy as jnp
from jax.experimental import pallas as pl
from jax.experimental.pallas import tpu as pltpu


def _round_up(v, m):
    return (v + m - 1) // m * m


def _aam_kernel(x_ref, wt_ref, label_ref, pred_ref, rowloss_ref, *,
                cos_m, sin_m, th, mm, scale, easy_margin, num_classes):
    # x_ref:       (TB, Dp)  f32   (zero-padded feature dim)
    # wt_ref:      (Dp, Cp)  bf16  (pre-normalized class weights, transposed)
    # label_ref:   (TB, 1)   int32
    # pred_ref:    (TB, Cp)  f32
    # rowloss_ref: (TB, 1)   f32
    x = x_ref[...]                                       # f32
    labels = label_ref[...]                              # (TB, 1) int32

    # F.normalize(x, dim=1) == x * rsqrt(max(sum(x^2), eps^2)), eps = 1e-12.
    sumsq = jnp.sum(x * x, axis=1, keepdims=True)
    inv_norm = jax.lax.rsqrt(jnp.maximum(sumsq, jnp.float32(1e-24)))
    x_n = (x * inv_norm).astype(jnp.bfloat16)

    # cosine = normalize(x) @ normalize(W).T on the MXU, f32 accumulation.
    cosine = jnp.dot(x_n, wt_ref[...], preferred_element_type=jnp.float32)

    sine = jnp.sqrt(jnp.clip(1.0 - cosine * cosine, 0.0, 1.0))
    phi = cosine * cos_m - sine * sin_m
    if easy_margin:
        phi = jnp.where(cosine > 0.0, phi, cosine)
    else:
        phi = jnp.where(cosine - th > 0.0, phi, cosine - mm)

    tb, cp = cosine.shape
    class_ids = jax.lax.broadcasted_iota(jnp.int32, (tb, cp), 1)
    target_mask = class_ids == labels                    # == one_hot.scatter_(1, label, 1)

    logits = jnp.where(target_mask, phi, cosine) * scale
    if num_classes != cp:
        # padded (fake) classes must not participate in the softmax
        logits = jnp.where(class_ids < num_classes, logits, jnp.float32(-1e30))

    # softmax -> prediction
    m = jnp.max(logits, axis=1, keepdims=True)
    e = jnp.exp(logits - m)
    s = jnp.sum(e, axis=1, keepdims=True)
    pred_ref[...] = e * pl.reciprocal(s, approx=True)

    # per-row cross-entropy: logsumexp - target logit (mean taken in wrapper)
    log_z = jnp.log(s) + m
    target_logit = jnp.sum(jnp.where(target_mask, logits, 0.0),
                           axis=1, keepdims=True)
    rowloss_ref[...] = log_z - target_logit


def aam_softmax_forward(x, labels, fc_weights, *,
                        margin=0.3, scale=15.0, easy_margin=False, tile_b=256):
    """Returns (prediction (B, C) f32, loss scalar f32)."""
    B, D = x.shape
    C, Dw = fc_weights.shape
    assert D == Dw and labels.shape == (B,)

    cos_m = math.cos(margin)
    sin_m = math.sin(margin)
    th = math.cos(math.pi - margin)
    mm = math.sin(math.pi - margin) * margin

    # Lane/sublane friendly padded shapes.
    Dp = _round_up(D, 128)
    Cp = _round_up(C, 128)
    TB = min(_round_up(B, 8), tile_b)     # <= 256: fits v7x's 64 MiB VMEM too
    Bp = _round_up(B, TB)
    grid = (Bp // TB,)

    # Hoisted once (not per batch-tile): normalize class weights, pad, transpose
    # for the MXU, cast to bf16 (f32 accumulation keeps accuracy).
    w = fc_weights.astype(jnp.float32)
    w_inv = jax.lax.rsqrt(jnp.maximum(jnp.sum(w * w, axis=1, keepdims=True), 1e-24))
    w_n = jnp.pad(w * w_inv, ((0, Cp - C), (0, Dp - D)))
    wt = jnp.transpose(w_n).astype(jnp.bfloat16)          # (Dp, Cp)

    x_p = jnp.pad(x.astype(jnp.float32), ((0, Bp - B), (0, Dp - D)))
    lbl = jnp.pad(labels.astype(jnp.int32).reshape(B, 1), ((0, Bp - B), (0, 0)))

    kernel = functools.partial(
        _aam_kernel, cos_m=cos_m, sin_m=sin_m, th=th, mm=mm,
        scale=float(scale), easy_margin=easy_margin, num_classes=C)

    # Explicit VMEM budget: resident weights + double-buffered tiles + headroom
    # for the (TB, Cp) f32 temporaries; capped at 64 MiB (safe on v7x/v6e/v5e).
    vmem_need = (Dp * Cp * 2            # resident normalized weights (bf16)
                 + 2 * TB * Dp * 4      # double-buffered x tiles
                 + 2 * TB * Cp * 4      # double-buffered prediction tiles
                 + 2 * TB * 4 * 2       # labels + per-row loss tiles
                 + 8 * TB * Cp * 4)     # elementwise temporaries headroom
    vmem_limit = int(min(64 * 2**20, max(32 * 2**20, vmem_need)))

    pred_p, row_loss = pl.pallas_call(
        kernel,
        grid=grid,
        out_shape=(
            jax.ShapeDtypeStruct((Bp, Cp), jnp.float32),
            jax.ShapeDtypeStruct((Bp, 1), jnp.float32),
        ),
        in_specs=[
            pl.BlockSpec((TB, Dp), lambda i: (i, 0)),   # x batch tile
            pl.BlockSpec((Dp, Cp), lambda i: (0, 0)),   # weights: constant block, stays resident
            pl.BlockSpec((TB, 1), lambda i: (i, 0)),    # labels batch tile
        ],
        out_specs=(
            pl.BlockSpec((TB, Cp), lambda i: (i, 0)),   # softmax prediction
            pl.BlockSpec((TB, 1), lambda i: (i, 0)),    # per-row CE loss
        ),
        compiler_params=pltpu.CompilerParams(
            dimension_semantics=("parallel",),          # uses both TCs on v7x
            vmem_limit_bytes=vmem_limit,
        ),
    )(x_p, wt, lbl)

    pred = pred_p[:B, :C]
    loss = jnp.sum(row_loss[:B, 0]) / B
    return pred, loss


def _reference(x, labels, w, margin, scale, easy_margin):
    def l2n(a):
        return a / jnp.maximum(jnp.linalg.norm(a, axis=1, keepdims=True), 1e-12)
    cos_m, sin_m = math.cos(margin), math.sin(margin)
    th = math.cos(math.pi - margin)
    mm = math.sin(math.pi - margin) * margin
    cosine = l2n(x) @ l2n(w).T
    sine = jnp.sqrt(jnp.clip(1.0 - cosine * cosine, 0.0, 1.0))
    phi = cosine * cos_m - sine * sin_m
    if easy_margin:
        phi = jnp.where(cosine > 0, phi, cosine)
    else:
        phi = jnp.where(cosine - th > 0, phi, cosine - mm)
    one_hot = jax.nn.one_hot(labels, w.shape[0], dtype=jnp.float32)
    out = (one_hot * phi + (1.0 - one_hot) * cosine) * scale
    pred = jax.nn.softmax(out, axis=1)
    loss = jnp.mean(jax.nn.logsumexp(out, axis=1) - jnp.sum(one_hot * out, axis=1))
    return pred, loss


if __name__ == "__main__":
    # Small shapes: batch=8, input_features=32, output_features(classes)=16
    B, D, C = 8, 32, 16
    key = jax.random.PRNGKey(0)
    kx, kw, kl = jax.random.split(key, 3)

    x = jax.random.normal(kx, (B, D), dtype=jnp.float32)
    labels = jax.random.randint(kl, (B,), 0, C, dtype=jnp.int32)

    # xavier_normal_(gain=1): std = sqrt(2 / (fan_in + fan_out))
    xavier_std = math.sqrt(2.0 / (D + C))
    fc_weights = jax.random.normal(kw, (C, D), dtype=jnp.float32) * xavier_std

    fwd = jax.jit(functools.partial(
        aam_softmax_forward, margin=0.3, scale=15.0, easy_margin=False))
    pred, loss = fwd(x, labels, fc_weights)
    jax.block_until_ready((pred, loss))

    assert pred.shape == (B, C)
    assert bool(jnp.isfinite(loss))

    # Sanity check against a pure-jnp reference (loose tol: bf16 MXU operands).
    pred_ref, loss_ref = _reference(x, labels, fc_weights, 0.3, 15.0, False)
    assert float(jnp.max(jnp.abs(pred - pred_ref))) < 0.1
    assert abs(float(loss) - float(loss_ref)) < 0.1

    print("KERNEL_OK")
</pallas_src>

<mosaic_0001>
module attributes {stable_mosaic.version = 11 : i64} {
  func.func @_aam_kernel(%arg0: i32, %arg1: memref<8x128xf32, #tpu.memory_space<vmem>>, %arg2: memref<128x128xbf16, #tpu.memory_space<vmem>>, %arg3: memref<8x1xi32, #tpu.memory_space<vmem>>, %arg4: memref<8x128xf32, #tpu.memory_space<vmem>>, %arg5: memref<8x1xf32, #tpu.memory_space<vmem>>) attributes {dimension_semantics = [#tpu.dimension_semantics<parallel>], iteration_bounds = array<i64: 1>, scalar_prefetch = 0 : i64, scratch_operands = 0 : i64, tpu.core_type = #tpu.core_type<tc>, window_params = [{transform_indices = @transform_0, window_bounds = array<i64: 8, 128>}, {pipeline_mode = #tpu.pipeline_mode<synchronous>, transform_indices = @transform_1, window_bounds = array<i64: 128, 128>}, {transform_indices = @transform_2, window_bounds = array<i64: 8, 1>}, {transform_indices = @transform_3, window_bounds = array<i64: 8, 128>}, {transform_indices = @transform_4, window_bounds = array<i64: 8, 1>}]} {
    %c0 = arith.constant 0 : index
    %c0_0 = arith.constant 0 : index
    %0 = vector.load %arg1[%c0, %c0_0] : memref<8x128xf32, #tpu.memory_space<vmem>>, vector<8x128xf32>
    %c0_1 = arith.constant 0 : index
    %c0_2 = arith.constant 0 : index
    %1 = vector.load %arg3[%c0_1, %c0_2] : memref<8x1xi32, #tpu.memory_space<vmem>>, vector<8x1xi32>
    %2 = arith.mulf %0, %0 : vector<8x128xf32>
    %cst = arith.constant dense<0.000000e+00> : vector<8xf32>
    %3 = vector.multi_reduction <add>, %2, %cst [1] : vector<8x128xf32> to vector<8xf32>
    %4 = vector.shape_cast %3 : vector<8xf32> to vector<8x1xf32>
    %cst_3 = arith.constant 1.000000e-24 : f32
    %5 = vector.broadcast %cst_3 : f32 to vector<8x1xf32>
    %6 = arith.maximumf %4, %5 : vector<8x1xf32>
    %7 = math.rsqrt %6 : vector<8x1xf32>
    %8 = vector.broadcast %7 : vector<8x1xf32> to vector<8x128xf32>
    %9 = arith.mulf %0, %8 : vector<8x128xf32>
    %10 = arith.truncf %9 : vector<8x128xf32> to vector<8x128xbf16>
    %c0_4 = arith.constant 0 : index
    %c0_5 = arith.constant 0 : index
    %11 = vector.load %arg2[%c0_4, %c0_5] : memref<128x128xbf16, #tpu.memory_space<vmem>>, vector<128x128xbf16>
    %cst_6 = arith.constant dense<0.000000e+00> : vector<8x128xf32>
    %12 = tpu.matmul %10, %11, %cst_6 {dimension_numbers = #tpu.dot_dimension_numbers<[1], [0], [0], [1], [0, 0, 1, 1], [], []>} : vector<8x128xbf16>, vector<128x128xbf16>, vector<8x128xf32> -> vector<8x128xf32>
    %13 = arith.mulf %12, %12 : vector<8x128xf32>
    %cst_7 = arith.constant 1.000000e+00 : f32
    %14 = vector.broadcast %cst_7 : f32 to vector<8x128xf32>
    %15 = arith.subf %14, %13 : vector<8x128xf32>
    %cst_8 = arith.constant 0.000000e+00 : f32
    %cst_9 = arith.constant 1.000000e+00 : f32
    %16 = vector.broadcast %cst_8 : f32 to vector<8x128xf32>
    %17 = arith.maximumf %16, %15 : vector<8x128xf32>
    %18 = vector.broadcast %cst_9 : f32 to vector<8x128xf32>
    %19 = arith.minimumf %18, %17 : vector<8x128xf32>
    %20 = math.sqrt %19 : vector<8x128xf32>
    %cst_10 = arith.constant 0.955336511 : f32
    %21 = vector.broadcast %cst_10 : f32 to vector<8x128xf32>
    %22 = arith.mulf %12, %21 : vector<8x128xf32>
    %cst_11 = arith.constant 0.295520216 : f32
    %23 = vector.broadcast %cst_11 : f32 to vector<8x128xf32>
    %24 = arith.mulf %20, %23 : vector<8x128xf32>
    %25 = arith.subf %22, %24 : vector<8x128xf32>
    %cst_12 = arith.constant -0.955336511 : f32
    %26 = vector.broadcast %cst_12 : f32 to vector<8x128xf32>
    %27 = arith.subf %12, %26 : vector<8x128xf32>
    %cst_13 = arith.constant 0.000000e+00 : f32
    %28 = vector.broadcast %cst_13 : f32 to vector<8x128xf32>
    %29 = arith.cmpf ogt, %27, %28 : vector<8x128xf32>
    %cst_14 = arith.constant 0.0886560603 : f32
    %30 = vector.broadcast %cst_14 : f32 to vector<8x128xf32>
    %31 = arith.subf %12, %30 : vector<8x128xf32>
    %32 = arith.select %29, %25, %31 : vector<8x128xi1>, vector<8x128xf32>
    %33 = tpu.iota {dimensions = array<i32: 1>} : vector<8x128xi32>
    %34 = vector.broadcast %1 : vector<8x1xi32> to vector<8x128xi32>
    %35 = arith.cmpi eq, %33, %34 : vector<8x128xi32>
    %36 = arith.select %35, %32, %12 : vector<8x128xi1>, vector<8x128xf32>
    %cst_15 = arith.constant 1.500000e+01 : f32
    %37 = vector.broadcast %cst_15 : f32 to vector<8x128xf32>
    %38 = arith.mulf %36, %37 : vector<8x128xf32>
    %c16_i32 = arith.constant 16 : i32
    %39 = vector.broadcast %c16_i32 : i32 to vector<8x128xi32>
    %40 = arith.cmpi slt, %33, %39 : vector<8x128xi32>
    %cst_16 = arith.constant -1.000000e+30 : f32
    %41 = vector.broadcast %cst_16 : f32 to vector<8x128xf32>
    %42 = arith.select %40, %38, %41 : vector<8x128xi1>, vector<8x128xf32>
    %cst_17 = arith.constant dense<0xFF800000> : vector<8xf32>
    %43 = vector.multi_reduction <maximumf>, %42, %cst_17 [1] : vector<8x128xf32> to vector<8xf32>
    %44 = vector.shape_cast %43 : vector<8xf32> to vector<8x1xf32>
    %45 = vector.broadcast %44 : vector<8x1xf32> to vector<8x128xf32>
    %46 = arith.subf %42, %45 : vector<8x128xf32>
    %47 = math.exp %46 : vector<8x128xf32>
    %cst_18 = arith.constant dense<0.000000e+00> : vector<8xf32>
    %48 = vector.multi_reduction <add>, %47, %cst_18 [1] : vector<8x128xf32> to vector<8xf32>
    %49 = vector.shape_cast %48 : vector<8xf32> to vector<8x1xf32>
    %50 = tpu.reciprocal %49 {approx = true} : vector<8x1xf32> -> vector<8x1xf32>
    %51 = vector.broadcast %50 : vector<8x1xf32> to vector<8x128xf32>
    %52 = arith.mulf %47, %51 : vector<8x128xf32>
    %c0_19 = arith.constant 0 : index
    %c0_20 = arith.constant 0 : index
    %53 = vector.load %arg4[%c0_19, %c0_20] : memref<8x128xf32, #tpu.memory_space<vmem>>, vector<8x128xf32>
    tpu.vector_store %arg4[%c0_19, %c0_20], %52 {strides = array<i32>} : memref<8x128xf32, #tpu.memory_space<vmem>>, vector<8x128xf32>,
    %54 = math.log %49 : vector<8x1xf32>
    %55 = arith.addf %54, %44 : vector<8x1xf32>
    %cst_21 = arith.constant 0.000000e+00 : f32
    %56 = vector.broadcast %cst_21 : f32 to vector<8x128xf32>
    %57 = arith.select %35, %42, %56 : vector<8x128xi1>, vector<8x128xf32>
    %cst_22 = arith.constant dense<0.000000e+00> : vector<8xf32>
    %58 = vector.multi_reduction <add>, %57, %cst_22 [1] : vector<8x128xf32> to vector<8xf32>
    %59 = vector.shape_cast %58 : vector<8xf32> to vector<8x1xf32>
    %60 = arith.subf %55, %59 : vector<8x1xf32>
    %c0_23 = arith.constant 0 : index
    %c0_24 = arith.constant 0 : index
    %61 = vector.load %arg5[%c0_23, %c0_24] : memref<8x1xf32, #tpu.memory_space<vmem>>, vector<8x1xf32>
    tpu.vector_store %arg5[%c0_23, %c0_24], %60 {strides = array<i32>} : memref<8x1xf32, #tpu.memory_space<vmem>>, vector<8x1xf32>,
    return
  }
  func.func @transform_0(%arg0: i32) -> (i32, i32) {
    %c0_i32 = arith.constant 0 : i32
    %c0_i32_0 = arith.constant 0 : i32
    return %arg0, %c0_i32 : i32, i32
  }
  func.func @transform_1(%arg0: i32) -> (i32, i32) {
    %c0_i32 = arith.constant 0 : i32
    %c0_i32_0 = arith.constant 0 : i32
    %c0_i32_1 = arith.constant 0 : i32
    return %c0_i32, %c0_i32_0 : i32, i32
  }
  func.func @transform_2(%arg0: i32) -> (i32, i32) {
    %c0_i32 = arith.constant 0 : i32
    %c0_i32_0 = arith.constant 0 : i32
    return %arg0, %c0_i32 : i32, i32
  }
  func.func @transform_3(%arg0: i32) -> (i32, i32) {
    %c0_i32 = arith.constant 0 : i32
    %c0_i32_0 = arith.constant 0 : i32
    return %arg0, %c0_i32 : i32, i32
  }
  func.func @transform_4(%arg0: i32) -> (i32, i32) {
    %c0_i32 = arith.constant 0 : i32
    %c0_i32_0 = arith.constant 0 : i32
    return %arg0, %c0_i32 : i32, i32
  }
}

</mosaic_0001>

<bundles_post_ra>
// kernel: aam_softmax_forward.1
= control target key start
LH: loop header
LB: loop body
LE: loop exit
PB: predicated region body
PF: predicated region fallthrough
CT: control target
= control target key end

     0   :  { %s328_s0 = inlined_call_operand.vmem [shape: f32[8,128], index: 0, kind: input, shape index: {}]   ;;  %s329_s1 = inlined_call_operand.vmem [shape: bf16[128,128], index: 1, kind: input, shape index: {}]   ;;  %s330_s2 = inlined_call_operand.vmem [shape: s32[8,1], index: 2, kind: input, shape index: {}]   ;;  %s331_s3 = inlined_call_operand.hbm [shape: f32[8,128], index: 3, kind: output, shape index: {0}]   ;;  %s332_s4 = inlined_call_operand.vmem [shape: f32[8,1], index: 4, kind: output, shape index: {1}]  }
   0x1   :  { %v17_v0 = vld [vmem:[%s328_s0] sm:$0xff]  ;;  %v225_v1 = vld [vmem:[%s329_s1 + $0x38] sm:$0xff] }
   0x2   :  { %v19_v2 = vmul.f32 %v17_v0, %v17_v0 }
   0x3   :  { %10 = vsyncpa [#allocation3], 0  ;;  %99 = vmatpush.bf16.msra.mxu0 %v225_v1  ;;  %v224_v3 = vld [vmem:[%s329_s1 + $0x30] sm:$0xff]  ;;  %v223_v4 = vld [vmem:[%s329_s1 + $0x28] sm:$0xff]  ;;  %v265_v11 = vmov 0   ;;  %v135_v35 = vlaneseq  ;;  %s171_s10 = sshll.u32 %s331_s3, 4  ;;  %s172_s10 = int_to_ptr.hbm [resolvable:$true] %s171_s10 }
   0x4   :  { %20 = vadd.xlane.f32.xlu0 %v19_v2  ;;  %v222_v5 = vld [vmem:[%s329_s1 + $0x20] sm:$0xff]  ;;  %v221_v6 = vld [vmem:[%s329_s1 + $0x18] sm:$0xff]  ;;  %v220_v7 = vld [vmem:[%s329_s1 + $0x10] sm:$0xff]  ;;  %vm162_vm8 = vcmask 7168  }
   0x5   :  { %v219_v8 = vld [vmem:[%s329_s1 + $0x8] sm:$0xff]  ;;  %v218_v9 = vld [vmem:[%s329_s1] sm:$0xff]  ;;  %228 = vset.pattern.permute.xlu0 %v265_v11  ;;  %v136_v39 = vand.u32 127, %v135_v35  ;;  %s266_s1 = smov [#allocation2]  }
   0x6   :  { %v18_v10 = vld [vmem:[%s330_s2] sm:$0xff]  ;;  %s169_s2 = sshll.u32 %s266_s1, 4  ;;  %s170_s2 = int_to_ptr.vmem [resolvable:$true] %s169_s2 }
   0x7   :  { %100 = vmatpush.bf16.msra.mxu0 %v224_v3  ;;  %vm143_vm7 = vcmp.lt.s32.totalorder %v136_v39, 16 }
   0xb   :  { %101 = vmatpush.bf16.msra.mxu0 %v223_v4 }
   0xf   :  { %102 = vmatpush.bf16.msra.mxu0 %v222_v5 }
  0x13   :  { %103 = vmatpush.bf16.msra.mxu0 %v221_v6 }
  0x17   :  { %104 = vmatpush.bf16.msra.mxu0 %v220_v7 }
  0x18   :  { %138 = vperm.xlu0 %228, %v18_v10  }
  0x1b   :  { %105 = vmatpush.bf16.msra.mxu0 %v219_v8 }
  0x1f   :  { %106 = vmatpush.bf16.msra.mxu0 %v218_v9 }
  0x77   :  { %v21_v12 = vpop.xlane.xlu0 %20 }
  0x78   :  { %v22_v13 = vmax.f32 %v21_v12, 1e-24 }
  0x7a   :  { %229 = vrsqrt.f32 %v22_v13  ;;  %vm29_vm1 = vweird.f32 %v22_v13 }
  0x80   :  { %v230_v14 = vpop.eup %229 }
  0x81   :  { %v24_v15 = vmul.f32 %v230_v14, %v22_v13  ;;  %vm30_vm0 = vweird.f32 %v230_v14 }
  0x82   :  { %vm31_vm2 = vmor %vm29_vm1, %vm30_vm0 }
  0x83   :  { %v25_v16 = vmul.f32 %v230_v14, %v24_v15 }
  0x85   :  { %v26_v17 = vmul.f32 0.5, %v25_v16 }
  0x87   :  { %v27_v18 = vsub.f32 1.5, %v26_v17 }
  0x89   :  { %v28_v19 = vmul.f32 %v230_v14, %v27_v18 }
  0x8a   :  { %v139_v42 = vpop.permute.xlu0 %138 }
  0x8b   :  { %v32_v20 = vsel %vm31_vm2, %v230_v14, %v28_v19  ;;  %vm140_vm5 = vcmp.eq.s32.totalorder %v136_v39, %v139_v42 }
  0x8c   :  { %v33_v21 = vmul.f32 %v32_v20, %v17_v0 }
  0x8e   :  { %v34_v22 = vpack.c.bf16 %v33_v21, %v33_v21 }
  0x90   :  { %107 = vmatmul.bf16.vlgmr.msra.gmra.mxu0 %v34_v22 }
 0x10d   :  { %v108_v23 = vpop.f32.mrf.mxu0 }
 0x10e   :  { %v112_v24 = vmul.f32 %v108_v23, %v108_v23  ;;  %v216_v41 = vadd.f32 0.9553365, %v108_v23  ;;  %v128_v43 = vmul.f32 0.9553365, %v108_v23  ;;  %v217_v45 = vadd.f32 -0.08865606, %v108_v23 }
 0x110   :  { %v113_v25 = vsub.f32 1.0, %v112_v24  ;;  %vm132_vm6 = vcmp.gt.f32.partialorder %v216_v41, 0.0 }
 0x112   :  { %v114_v26 = vmax.f32 %v113_v25, 0.0 }
 0x114   :  { %v115_v27 = vmin.f32 %v114_v26, 1.0 }
 0x115   :  { %v110_v28 = vpop.f32.mrf.mxu0 }
 0x116   :  { %231 = vrsqrt.f32 %v115_v27  ;;  %vm123_vm3 = vcmp.eq.f32.partialorder %v115_v27, inf  ;;  %v126_v37 = vand.u32 2147483648, %v115_v27  ;;  %vm125_vm4 = vcmp.eq.f32.partialorder %v115_v27, 0.0 }
 0x11c   :  { %v232_v29 = vpop.eup %231 }
 0x11d   :  { %v117_v30 = vmul.f32 %v232_v29, %v115_v27 }
 0x11f   :  { %v118_v31 = vmul.f32 %v232_v29, %v117_v30 }
 0x121   :  { %v119_v32 = vmul.f32 0.5, %v118_v31 }
 0x123   :  { %v120_v33 = vsub.f32 1.5, %v119_v32 }
 0x125   :  { %v121_v34 = vmul.f32 %v232_v29, %v120_v33 }
 0x127   :  { %v122_v36 = vmul.f32 %v121_v34, %v115_v27 }
 0x129   :  { %v124_v38 = vsel %vm123_vm3, %v115_v27, %v122_v36 }
 0x12a   :  { %v127_v40 = vsel %vm125_vm4, %v126_v37, %v124_v38 }
 0x12b   :  { %v129_v44 = vmul.f32 0.29552022, %v127_v40 }
 0x12d   :  { %v130_v46 = vsub.f32 %v128_v43, %v129_v44 }
 0x12f   :  { %v134_v47 = vsel %vm132_vm6, %v130_v46, %v217_v45 }
 0x130   :  { %v141_v48 = vsel %vm140_vm5, %v134_v47, %v108_v23 }
 0x131   :  { %v142_v49 = vmul.f32 15.0, %v141_v48 }
 0x133   :  { %v144_v50 = vsel %vm143_vm7, %v142_v49, -1e+30 }
 0x134   :  { %145 = vmax.xlane.f32.xlu1 %v144_v50  ;;  %v158_v51 = vsel %vm140_vm5, %v144_v50, 0.0 }
 0x135   :  { %159 = vadd.xlane.f32.xlu2 %v158_v51 }
 0x1a7   :  { %v146_v52 = vpop.xlane.xlu1 %145 }
 0x1a8   :  { %v147_v53 = vsub.f32 %v144_v50, %v146_v52  ;;  %v160_v62 = vpop.xlane.xlu2 %159 }
 0x1aa   :  { %v148_v54 = vmul.f32 1.442695, %v147_v53 }
 0x1ac   :  { %233 = vpow2.f32 %v148_v54 }
 0x1b2   :  { %v234_v55 = vpop.eup %233 }
 0x1b3   :  { %150 = vadd.xlane.f32.xlu1 %v234_v55 }
 0x226   :  { %v151_v56 = vpop.xlane.xlu1 %150 }
 0x227   :  { %235 = vrcp.f32 %v151_v56 }
 0x228   :  { %237 = vlog2.f32 %v151_v56 }
 0x22d   :  { %v236_v57 = vpop.eup %235 }
 0x22e   :  { %v238_v58 = vpop.eup %237  ;;  %v153_v59 = vmul.f32 %v236_v57, %v234_v55 }
 0x22f   :  { %v156_v60 = vmul.f32 0.6931472, %v238_v58 }
 0x230   :  { %154 = vst [vmem:[#allocation2] sm:$0xff] %v153_v59 }
 0x231   :  { %v157_v61 = vadd.f32 %v156_v60, %v146_v52  ;;  %174 = dma.vmem_to_hbm [thread:$0]  %s170_s2, 128, %s172_s10, [#allocation3]  }
 0x233   :  { %v161_v63 = vsub.f32 %v157_v61, %v160_v62 }
 0x235   :  { %163 = vst.msk [vmem:[%s332_s4] sm:$0xff] %vm162_vm8, %v161_v63 }
 0x236   :  { %263 = dma.done.wait [#allocation3], 128  }
 0x237   :  { %264 = vsyncadd [#allocation3], 4294967168 }
 0x238   :  { %183 = vsyncpa [#allocation3], 1 }

</bundles_post_ra>
